<compile_context>
chip_gen: v5e
topology: v5e:2x2
jax: 0.10.0
libtpu: 0.0.40
codegen_flags: <defaults>
</compile_context>

<pallas_src>
import functools
import math

import jax
import jax.numpy as jnp
import numpy as np
from jax.experimental import pallas as pl
from jax.experimental.pallas import tpu as pltpu

_LN_EPS = 1e-5
_MASK_NEG = 1e9


# --------------------------- hardware-aware knobs ----------------------------
def _vmem_capacity_bytes():
    # Generation-aware VMEM capacity (128 MiB on v5e/v6e, 64 MiB per-TC on v7x).
    # Only the hardware query is guarded; kernel errors are never swallowed.
    try:
        cap = getattr(pltpu.get_tpu_info(), "vmem_capacity_bytes", None)
        if cap:
            return int(cap)
    except Exception:
        pass
    return 64 * 1024 * 1024  # conservative default (v7x floor)


def _vmem_limit_bytes(working_set_bytes):
    cap = _vmem_capacity_bytes()
    hi = (cap * 7) // 8  # headroom for Mosaic-internal scratch
    return int(min(max(2 * working_set_bytes, 32 * 1024 * 1024), hi))


def _seq_tile_target():
    # 128 on v7x (64 MiB VMEM) and v5e (128-wide MXU); 256 on v6e-class (256-wide MXU, 128 MiB).
    if _vmem_capacity_bytes() < 96 * 1024 * 1024:
        return 128
    try:
        kind = jax.devices()[0].device_kind.lower()
    except Exception:
        kind = ""
    return 128 if "v5" in kind else 256


# --------------------------- kernel 1: LN1 + Q/K/V ----------------------------
def _ln_qkv_kernel(x_ref, g_ref, b_ref,
                   wq_ref, bq_ref, wk_ref, bk_ref, wv_ref, bv_ref,
                   q_ref, k_ref, v_ref, *, num_heads, head_dim, compute_dtype):
    x = x_ref[...]                                             # (ts, D) f32
    mu = jnp.mean(x, axis=-1, keepdims=True)
    var = jnp.mean((x - mu) ** 2, axis=-1, keepdims=True)
    xn = (x - mu) * jax.lax.rsqrt(var + _LN_EPS)
    xn = (xn * g_ref[...] + b_ref[...]).astype(compute_dtype)  # bf16 MXU inputs, f32 accumulate

    # Full-depth (ts,D)@(D,D) projections (best MXU fill).  1/sqrt(dk) is pre-folded into wq/bq.
    q = jnp.dot(xn, wq_ref[...], preferred_element_type=jnp.float32) + bq_ref[...]
    k = jnp.dot(xn, wk_ref[...], preferred_element_type=jnp.float32) + bk_ref[...]
    v = jnp.dot(xn, wv_ref[...], preferred_element_type=jnp.float32) + bv_ref[...]

    # Head split done here via cheap lane-slice stores (no XLA transpose / extra HBM round trip).
    for h in range(num_heads):
        sl = slice(h * head_dim, (h + 1) * head_dim)
        q_ref[h] = q[:, sl].astype(q_ref.dtype)
        k_ref[h] = k[:, sl].astype(k_ref.dtype)
        v_ref[h] = v[:, sl].astype(v_ref.dtype)


# ---------------------- kernel 2: flash attention core ------------------------
def _flash_attn_kernel(q_ref, k_ref, v_ref, bias_ref, ctx_ref,
                       m_scr, l_scr, acc_scr,
                       *, num_heads, head_dim, compute_dtype):
    j = pl.program_id(2)                                       # kv-tile axis ("arbitrary")

    @pl.when(j == 0)
    def _():
        m_scr[...] = jnp.full_like(m_scr, -jnp.inf)
        l_scr[...] = jnp.zeros_like(l_scr)
        acc_scr[...] = jnp.zeros_like(acc_scr)

    q = q_ref[...]                                             # (H, tq, dk)  compute dtype
    k = k_ref[...]                                             # (H, tkv, dk)
    v = v_ref[...]                                             # (H, tkv, dk)

    # All heads in one batched MXU contraction; f32 accumulation.  Scale is folded into wq.
    s = jnp.einsum("hqd,hkd->hqk", q, k, preferred_element_type=jnp.float32)
    s = s + bias_ref[...][None]                                # (1,tkv) additive key bias, bcast H,q

    # Online softmax (flash-attention style); exp runs in the compute dtype
    # (bf16 EUP on v6e/v7x ~2x throughput; exact f32 when compute_dtype == f32).
    m_prev = m_scr[...]
    m_new = jnp.maximum(m_prev, jnp.max(s, axis=-1, keepdims=True))
    alpha = jnp.exp(m_prev - m_new)                            # (H, tq, 1) f32
    p = jnp.exp((s - m_new).astype(compute_dtype))             # (H, tq, tkv)
    l_scr[...] = alpha * l_scr[...] + jnp.sum(p.astype(jnp.float32), axis=-1, keepdims=True)
    acc_scr[...] = alpha * acc_scr[...] + jnp.einsum(
        "hqk,hkd->hqd", p, v, preferred_element_type=jnp.float32)
    m_scr[...] = m_new

    @pl.when(j == pl.num_programs(2) - 1)
    def _():
        # Exact reciprocal (epilogue-only, negligible cost; approx vrcp broke the f32 check).
        inv_l = pl.reciprocal(l_scr[...], approx=False)        # (H, tq, 1)
        acc = acc_scr[...]                                     # (H, tq, dk) f32
        # Relayout (H,tq,dk) -> (tq,D) with per-head lane-slice stores (store slots, off the MXU),
        # so the out-projection downstream is a single D-deep matmul.
        for h in range(num_heads):
            sl = slice(h * head_dim, (h + 1) * head_dim)
            ctx_ref[:, sl] = (acc[h] * inv_l[h]).astype(ctx_ref.dtype)


# --------- kernel 3: out-proj + residual-1 + LN2 + FFN (d_ff-tiled) + residual-2 ---------
def _out_ffn_kernel(ctx_ref, x_ref, wo_ref, bo_ref, g2_ref, b2g_ref,
                    w1_ref, b1_ref, w2_ref, b2_ref, o_ref,
                    y_scr, yn_scr, acc_scr, *, compute_dtype):
    c = pl.program_id(2)                                       # d_ff-chunk axis ("arbitrary")

    @pl.when(c == 0)
    def _():
        # Single full-depth out-projection against the original (D,D) wo.
        attn = jnp.dot(ctx_ref[...], wo_ref[...], preferred_element_type=jnp.float32) + bo_ref[...]
        y = attn + x_ref[...]                                  # residual 1 (dropout p=0 -> identity)
        y_scr[...] = y
        mu = jnp.mean(y, axis=-1, keepdims=True)
        var = jnp.mean((y - mu) ** 2, axis=-1, keepdims=True)
        yn = (y - mu) * jax.lax.rsqrt(var + _LN_EPS)
        yn_scr[...] = (yn * g2_ref[...] + b2g_ref[...]).astype(compute_dtype)
        acc_scr[...] = jnp.zeros_like(acc_scr)

    # One d_ff chunk: acc += relu(yn @ w1[:, chunk] + b1[chunk]) @ w2[chunk, :]
    h1 = jnp.dot(yn_scr[...], w1_ref[...], preferred_element_type=jnp.float32) + b1_ref[...]
    h1 = jnp.maximum(h1, 0.0).astype(compute_dtype)
    acc_scr[...] += jnp.dot(h1, w2_ref[...], preferred_element_type=jnp.float32)

    @pl.when(c == pl.num_programs(2) - 1)
    def _():
        o_ref[...] = (acc_scr[...] + b2_ref[...] + y_scr[...]).astype(o_ref.dtype)   # residual 2


# ---------------------------------- wrapper -----------------------------------
def _encoder_block_pallas(x, key_bias, params, *, num_heads, compute_dtype):
    B, S0, D = x.shape
    assert D % num_heads == 0
    dk = D // num_heads
    d_ff0 = params["w1"].shape[1]
    cd = compute_dtype
    cd_sz = jnp.dtype(cd).itemsize

    # ------- generation-aware sequence tiling; pad S (pad keys masked via the bias) -------
    tile_target = _seq_tile_target()
    if S0 <= tile_target:
        ts, S = S0, S0
    else:
        ts = tile_target
        S = ((S0 + ts - 1) // ts) * ts
    if S != S0:
        x = jnp.pad(x, ((0, 0), (0, S - S0), (0, 0)))
        key_bias = jnp.pad(key_bias, ((0, 0), (0, 0), (0, S - S0)),
                           constant_values=-_MASK_NEG)
    n_s = S // ts

    # ------- d_ff tiling: FFN weights streamed in chunks, never fully VMEM-resident -------
    tf = min(d_ff0, 512)
    d_ff = ((d_ff0 + tf - 1) // tf) * tf
    w1, b1, w2 = params["w1"], params["b1"], params["w2"]
    if d_ff != d_ff0:
        w1 = jnp.pad(w1, ((0, 0), (0, d_ff - d_ff0)))
        b1 = jnp.pad(b1, ((0, 0), (0, d_ff - d_ff0)))
        w2 = jnp.pad(w2, ((0, d_ff - d_ff0), (0, 0)))
    n_ff = d_ff // tf

    # ------- one-time XLA-level weight prep: fold 1/sqrt(dk), cast to compute dtype -------
    inv_sqrt_dk = 1.0 / math.sqrt(dk)
    wq = (params["wq"] * inv_sqrt_dk).astype(cd)
    bq = params["bq"] * inv_sqrt_dk
    wk = params["wk"].astype(cd)
    wv = params["wv"].astype(cd)
    wo = params["wo"].astype(cd)
    w1c = w1.astype(cd)
    w2c = w2.astype(cd)

    def const_spec(shape):
        return pl.BlockSpec(shape, lambda *_: (0,) * len(shape))

    # ---------------- kernel 1: LN1 + fused Q/K/V, written as (B,H,S,dk) ----------------
    qkv_ws = (ts * D * 4 * 2 + 3 * ts * D * cd_sz * 2 + 3 * D * D * cd_sz * 2 + 16 * D * 4)
    q, k, v = pl.pallas_call(
        functools.partial(_ln_qkv_kernel, num_heads=num_heads, head_dim=dk, compute_dtype=cd),
        out_shape=[jax.ShapeDtypeStruct((B, num_heads, S, dk), cd)] * 3,
        grid_spec=pltpu.PrefetchScalarGridSpec(
            num_scalar_prefetch=0,
            grid=(B, n_s),
            in_specs=[
                pl.BlockSpec((pl.Squeezed(), ts, D), lambda b, s: (b, s, 0)),
                const_spec((1, D)), const_spec((1, D)),          # ln1 gamma/beta
                const_spec((D, D)), const_spec((1, D)),          # wq (scaled), bq (scaled)
                const_spec((D, D)), const_spec((1, D)),          # wk, bk
                const_spec((D, D)), const_spec((1, D)),          # wv, bv
            ],
            out_specs=[pl.BlockSpec((pl.Squeezed(), num_heads, ts, dk),
                                    lambda b, s: (b, 0, s, 0))] * 3,
        ),
        compiler_params=pltpu.CompilerParams(
            dimension_semantics=("parallel", "parallel"),
            vmem_limit_bytes=_vmem_limit_bytes(qkv_ws),
        ),
    )(x, params["ln1_g"], params["ln1_b"], wq, bq, wk, params["bk"], wv, params["bv"])

    # --------------------------- kernel 2: flash attention ---------------------------
    tq = tkv = ts
    n_q, n_kv = S // tq, S // tkv
    attn_ws = (3 * num_heads * ts * dk * cd_sz * 2
               + tkv * 4 * 2
               + tq * D * cd_sz * 2
               + num_heads * tq * (dk + 2) * 4
               + 2 * num_heads * tq * tkv * 4)
    ctx = pl.pallas_call(
        functools.partial(_flash_attn_kernel, num_heads=num_heads, head_dim=dk, compute_dtype=cd),
        out_shape=jax.ShapeDtypeStruct((B, S, D), cd),
        grid_spec=pltpu.PrefetchScalarGridSpec(
            num_scalar_prefetch=0,
            grid=(B, n_q, n_kv),
            in_specs=[
                pl.BlockSpec((pl.Squeezed(), num_heads, tq, dk), lambda b, i, j: (b, 0, i, 0)),
                pl.BlockSpec((pl.Squeezed(), num_heads, tkv, dk), lambda b, i, j: (b, 0, j, 0)),
                pl.BlockSpec((pl.Squeezed(), num_heads, tkv, dk), lambda b, i, j: (b, 0, j, 0)),
                pl.BlockSpec((pl.Squeezed(), 1, tkv), lambda b, i, j: (b, 0, j)),   # key bias
            ],
            out_specs=pl.BlockSpec((pl.Squeezed(), tq, D), lambda b, i, j: (b, i, 0)),
            scratch_shapes=[
                pltpu.VMEM((num_heads, tq, 1), jnp.float32),    # running max
                pltpu.VMEM((num_heads, tq, 1), jnp.float32),    # running denom
                pltpu.VMEM((num_heads, tq, dk), jnp.float32),   # running context accumulator
            ],
        ),
        compiler_params=pltpu.CompilerParams(
            dimension_semantics=("parallel", "parallel", "arbitrary"),
            vmem_limit_bytes=_vmem_limit_bytes(attn_ws),
        ),
    )(q, k, v, key_bias)

    # ------ kernel 3: out-proj + residual-1 + LN2 + FFN (streamed over d_ff) + residual-2 ------
    ffn_ws = (2 * ts * D * 4 * 2 + ts * D * cd_sz * 2
              + D * D * cd_sz * 2
              + 2 * D * tf * cd_sz * 2
              + 3 * ts * D * 4
              + (4 * D + tf) * 4)
    out = pl.pallas_call(
        functools.partial(_out_ffn_kernel, compute_dtype=cd),
        out_shape=jax.ShapeDtypeStruct((B, S, D), x.dtype),
        grid_spec=pltpu.PrefetchScalarGridSpec(
            num_scalar_prefetch=0,
            grid=(B, n_s, n_ff),
            in_specs=[
                pl.BlockSpec((pl.Squeezed(), ts, D), lambda b, i, c: (b, i, 0)),   # ctx
                pl.BlockSpec((pl.Squeezed(), ts, D), lambda b, i, c: (b, i, 0)),   # x (residual 1)
                const_spec((D, D)), const_spec((1, D)),                            # wo, bo
                const_spec((1, D)), const_spec((1, D)),                            # ln2 gamma/beta
                pl.BlockSpec((D, tf), lambda b, i, c: (0, c)),                     # w1 chunk
                pl.BlockSpec((1, tf), lambda b, i, c: (0, c)),                     # b1 chunk
                pl.BlockSpec((tf, D), lambda b, i, c: (c, 0)),                     # w2 chunk
                const_spec((1, D)),                                                # b2
            ],
            out_specs=pl.BlockSpec((pl.Squeezed(), ts, D), lambda b, i, c: (b, i, 0)),
            scratch_shapes=[
                pltpu.VMEM((ts, D), jnp.float32),     # y (post residual-1)
                pltpu.VMEM((ts, D), cd),              # LN2(y) in compute dtype
                pltpu.VMEM((ts, D), jnp.float32),     # FFN accumulator
            ],
        ),
        compiler_params=pltpu.CompilerParams(
            dimension_semantics=("parallel", "parallel", "arbitrary"),
            vmem_limit_bytes=_vmem_limit_bytes(ffn_ws),
        ),
    )(ctx, x, wo, params["bo"], params["ln2_g"], params["ln2_b"],
      w1c, b1, w2c, params["b2"])

    if S != S0:
        out = out[:, :S0, :]
    return out


def encoder_block(x, src_mask, params, *, num_heads, compute_dtype=jnp.bfloat16):
    """src_mask: (B, 1, S, S) with 1.0 = attend, 0.0 = masked (key-padding mask)."""
    B, S, _ = x.shape
    # The O(S^2) mask is reduced at the XLA level to a per-key additive bias so it is never
    # streamed from HBM per kv step.
    # TODO(synk): masks that genuinely vary per query position would need an additive-bias block
    # streamed per (q, kv) tile; standard encoder key-padding masks are fully covered here.
    key_bias = ((src_mask[:, 0, 0, :] - 1.0) * _MASK_NEG).astype(jnp.float32).reshape(B, 1, S)
    return _encoder_block_pallas(x, key_bias, params, num_heads=num_heads,
                                 compute_dtype=compute_dtype)


# ------------------------------ pure-JAX reference ----------------------------
def encoder_block_ref(x, mask, params, *, num_heads):
    D = x.shape[-1]
    dk = D // num_heads

    def ln(z, g, b):
        mu = jnp.mean(z, axis=-1, keepdims=True)
        var = jnp.mean((z - mu) ** 2, axis=-1, keepdims=True)
        return (z - mu) / jnp.sqrt(var + _LN_EPS) * g + b

    xn = ln(x, params["ln1_g"], params["ln1_b"])
    q = xn @ params["wq"] + params["bq"]
    k = xn @ params["wk"] + params["bk"]
    v = xn @ params["wv"] + params["bv"]
    B, S, _ = x.shape
    q = q.reshape(B, S, num_heads, dk).transpose(0, 2, 1, 3)
    k = k.reshape(B, S, num_heads, dk).transpose(0, 2, 1, 3)
    v = v.reshape(B, S, num_heads, dk).transpose(0, 2, 1, 3)
    scores = jnp.einsum("bhqd,bhkd->bhqk", q, k) / math.sqrt(dk)
    scores = jnp.where(mask == 0.0, -1e9, scores)
    p = jax.nn.softmax(scores, axis=-1)
    ctx = jnp.einsum("bhqk,bhkd->bhqd", p, v).transpose(0, 2, 1, 3).reshape(B, S, D)
    attn = ctx @ params["wo"] + params["bo"]
    y = attn + x
    yn = ln(y, params["ln2_g"], params["ln2_b"])
    ff = jnp.maximum(yn @ params["w1"] + params["b1"], 0.0) @ params["w2"] + params["b2"]
    return ff + y


# ------------------------------------ main -------------------------------------
if __name__ == "__main__":
    B, S, D, H, DFF = 2, 8, 32, 4, 64
    key = jax.random.PRNGKey(0)
    keys = jax.random.split(key, 12)

    def init_w(k_, shape, fan_in):
        return jax.random.normal(k_, shape, jnp.float32) / math.sqrt(fan_in)

    params = {
        "ln1_g": jnp.ones((1, D), jnp.float32),
        "ln1_b": jnp.zeros((1, D), jnp.float32),
        "wq": init_w(keys[0], (D, D), D), "bq": jnp.zeros((1, D), jnp.float32),
        "wk": init_w(keys[1], (D, D), D), "bk": jnp.zeros((1, D), jnp.float32),
        "wv": init_w(keys[2], (D, D), D), "bv": jnp.zeros((1, D), jnp.float32),
        "wo": init_w(keys[3], (D, D), D),
        "bo": 0.01 * jax.random.normal(keys[4], (1, D), jnp.float32),
        "ln2_g": jnp.ones((1, D), jnp.float32),
        "ln2_b": jnp.zeros((1, D), jnp.float32),
        "w1": init_w(keys[5], (D, DFF), D),
        "b1": 0.01 * jax.random.normal(keys[6], (1, DFF), jnp.float32),
        "w2": init_w(keys[7], (DFF, D), DFF),
        "b2": 0.01 * jax.random.normal(keys[8], (1, D), jnp.float32),
    }

    x = jax.random.normal(keys[9], (B, S, D), jnp.float32)
    # key-padding style mask: batch 0 fully visible, batch 1 masks last 2 keys
    mask_np = np.ones((B, 1, S, S), dtype=np.float32)
    mask_np[1, :, :, S - 2:] = 0.0
    mask = jnp.asarray(mask_np)

    ref = encoder_block_ref(x, mask, params, num_heads=H)

    # f32 compute path: structural correctness check (exact softmax reciprocal, f32 matmuls).
    out_f32 = jax.block_until_ready(
        encoder_block(x, mask, params, num_heads=H, compute_dtype=jnp.float32))
    np.testing.assert_allclose(np.asarray(out_f32), np.asarray(ref), rtol=1e-2, atol=1e-2)

    # Default bf16 MXU path (f32 accumulation): loose check vs the f32 reference.
    out_bf16 = jax.block_until_ready(encoder_block(x, mask, params, num_heads=H))
    np.testing.assert_allclose(np.asarray(out_bf16, dtype=np.float32), np.asarray(ref),
                               rtol=1e-1, atol=1e-1)

    print("KERNEL_OK")
</pallas_src>

<mosaic_0001>
module attributes {stable_mosaic.version = 11 : i64} {
  func.func @_ln_qkv_kernel(%arg0: i32, %arg1: i32, %arg2: memref<1x8x32xf32, #tpu.memory_space<vmem>>, %arg3: memref<1x32xf32, #tpu.memory_space<vmem>>, %arg4: memref<1x32xf32, #tpu.memory_space<vmem>>, %arg5: memref<32x32xf32, #tpu.memory_space<vmem>>, %arg6: memref<1x32xf32, #tpu.memory_space<vmem>>, %arg7: memref<32x32xf32, #tpu.memory_space<vmem>>, %arg8: memref<1x32xf32, #tpu.memory_space<vmem>>, %arg9: memref<32x32xf32, #tpu.memory_space<vmem>>, %arg10: memref<1x32xf32, #tpu.memory_space<vmem>>, %arg11: memref<1x4x8x8xf32, #tpu.memory_space<vmem>>, %arg12: memref<1x4x8x8xf32, #tpu.memory_space<vmem>>, %arg13: memref<1x4x8x8xf32, #tpu.memory_space<vmem>>) attributes {dimension_semantics = [#tpu.dimension_semantics<parallel>, #tpu.dimension_semantics<parallel>], iteration_bounds = array<i64: 2, 1>, scalar_prefetch = 0 : i64, scratch_operands = 0 : i64, tpu.core_type = #tpu.core_type<tc>, window_params = [{transform_indices = @transform_0, window_bounds = array<i64: 1, 8, 32>}, {pipeline_mode = #tpu.pipeline_mode<synchronous>, transform_indices = @transform_1, window_bounds = array<i64: 1, 32>}, {pipeline_mode = #tpu.pipeline_mode<synchronous>, transform_indices = @transform_2, window_bounds = array<i64: 1, 32>}, {pipeline_mode = #tpu.pipeline_mode<synchronous>, transform_indices = @transform_3, window_bounds = array<i64: 32, 32>}, {pipeline_mode = #tpu.pipeline_mode<synchronous>, transform_indices = @transform_4, window_bounds = array<i64: 1, 32>}, {pipeline_mode = #tpu.pipeline_mode<synchronous>, transform_indices = @transform_5, window_bounds = array<i64: 32, 32>}, {pipeline_mode = #tpu.pipeline_mode<synchronous>, transform_indices = @transform_6, window_bounds = array<i64: 1, 32>}, {pipeline_mode = #tpu.pipeline_mode<synchronous>, transform_indices = @transform_7, window_bounds = array<i64: 32, 32>}, {pipeline_mode = #tpu.pipeline_mode<synchronous>, transform_indices = @transform_8, window_bounds = array<i64: 1, 32>}, {transform_indices = @transform_9, window_bounds = array<i64: 1, 4, 8, 8>}, {transform_indices = @transform_10, window_bounds = array<i64: 1, 4, 8, 8>}, {transform_indices = @transform_11, window_bounds = array<i64: 1, 4, 8, 8>}]} {
    %c0 = arith.constant 0 : index
    %c0_0 = arith.constant 0 : index
    %c0_1 = arith.constant 0 : index
    %0 = vector.load %arg2[%c0, %c0_0, %c0_1] : memref<1x8x32xf32, #tpu.memory_space<vmem>>, vector<1x8x32xf32>
    %1 = vector.shape_cast %0 : vector<1x8x32xf32> to vector<8x32xf32>
    %cst = arith.constant dense<0.000000e+00> : vector<8xf32>
    %2 = vector.multi_reduction <add>, %1, %cst [1] : vector<8x32xf32> to vector<8xf32>
    %3 = vector.shape_cast %2 : vector<8xf32> to vector<8x1xf32>
    %cst_2 = arith.constant 3.200000e+01 : f32
    %4 = vector.broadcast %cst_2 : f32 to vector<8x1xf32>
    %5 = arith.divf %3, %4 : vector<8x1xf32>
    %6 = vector.broadcast %5 : vector<8x1xf32> to vector<8x32xf32>
    %7 = arith.subf %1, %6 : vector<8x32xf32>
    %8 = arith.mulf %7, %7 : vector<8x32xf32>
    %cst_3 = arith.constant dense<0.000000e+00> : vector<8xf32>
    %9 = vector.multi_reduction <add>, %8, %cst_3 [1] : vector<8x32xf32> to vector<8xf32>
    %10 = vector.shape_cast %9 : vector<8xf32> to vector<8x1xf32>
    %cst_4 = arith.constant 3.200000e+01 : f32
    %11 = vector.broadcast %cst_4 : f32 to vector<8x1xf32>
    %12 = arith.divf %10, %11 : vector<8x1xf32>
    %13 = vector.broadcast %5 : vector<8x1xf32> to vector<8x32xf32>
    %14 = arith.subf %1, %13 : vector<8x32xf32>
    %cst_5 = arith.constant 9.99999974E-6 : f32
    %15 = vector.broadcast %cst_5 : f32 to vector<8x1xf32>
    %16 = arith.addf %12, %15 : vector<8x1xf32>
    %17 = math.rsqrt %16 : vector<8x1xf32>
    %18 = vector.broadcast %17 : vector<8x1xf32> to vector<8x32xf32>
    %19 = arith.mulf %14, %18 : vector<8x32xf32>
    %c0_6 = arith.constant 0 : index
    %c0_7 = arith.constant 0 : index
    %20 = vector.load %arg3[%c0_6, %c0_7] : memref<1x32xf32, #tpu.memory_space<vmem>>, vector<1x32xf32>
    %21 = vector.broadcast %20 : vector<1x32xf32> to vector<8x32xf32>
    %22 = arith.mulf %19, %21 : vector<8x32xf32>
    %c0_8 = arith.constant 0 : index
    %c0_9 = arith.constant 0 : index
    %23 = vector.load %arg4[%c0_8, %c0_9] : memref<1x32xf32, #tpu.memory_space<vmem>>, vector<1x32xf32>
    %24 = vector.broadcast %23 : vector<1x32xf32> to vector<8x32xf32>
    %25 = arith.addf %22, %24 : vector<8x32xf32>
    %c0_10 = arith.constant 0 : index
    %c0_11 = arith.constant 0 : index
    %26 = vector.load %arg5[%c0_10, %c0_11] : memref<32x32xf32, #tpu.memory_space<vmem>>, vector<32x32xf32>
    %cst_12 = arith.constant dense<0.000000e+00> : vector<8x32xf32>
    %27 = tpu.matmul %25, %26, %cst_12 {dimension_numbers = #tpu.dot_dimension_numbers<[1], [0], [0], [1], [0, 0, 1, 1], [], []>} : vector<8x32xf32>, vector<32x32xf32>, vector<8x32xf32> -> vector<8x32xf32>
    %c0_13 = arith.constant 0 : index
    %c0_14 = arith.constant 0 : index
    %28 = vector.load %arg6[%c0_13, %c0_14] : memref<1x32xf32, #tpu.memory_space<vmem>>, vector<1x32xf32>
    %29 = vector.broadcast %28 : vector<1x32xf32> to vector<8x32xf32>
    %30 = arith.addf %27, %29 : vector<8x32xf32>
    %c0_15 = arith.constant 0 : index
    %c0_16 = arith.constant 0 : index
    %31 = vector.load %arg7[%c0_15, %c0_16] : memref<32x32xf32, #tpu.memory_space<vmem>>, vector<32x32xf32>
    %cst_17 = arith.constant dense<0.000000e+00> : vector<8x32xf32>
    %32 = tpu.matmul %25, %31, %cst_17 {dimension_numbers = #tpu.dot_dimension_numbers<[1], [0], [0], [1], [0, 0, 1, 1], [], []>} : vector<8x32xf32>, vector<32x32xf32>, vector<8x32xf32> -> vector<8x32xf32>
    %c0_18 = arith.constant 0 : index
    %c0_19 = arith.constant 0 : index
    %33 = vector.load %arg8[%c0_18, %c0_19] : memref<1x32xf32, #tpu.memory_space<vmem>>, vector<1x32xf32>
    %34 = vector.broadcast %33 : vector<1x32xf32> to vector<8x32xf32>
    %35 = arith.addf %32, %34 : vector<8x32xf32>
    %c0_20 = arith.constant 0 : index
    %c0_21 = arith.constant 0 : index
    %36 = vector.load %arg9[%c0_20, %c0_21] : memref<32x32xf32, #tpu.memory_space<vmem>>, vector<32x32xf32>
    %cst_22 = arith.constant dense<0.000000e+00> : vector<8x32xf32>
    %37 = tpu.matmul %25, %36, %cst_22 {dimension_numbers = #tpu.dot_dimension_numbers<[1], [0], [0], [1], [0, 0, 1, 1], [], []>} : vector<8x32xf32>, vector<32x32xf32>, vector<8x32xf32> -> vector<8x32xf32>
    %c0_23 = arith.constant 0 : index
    %c0_24 = arith.constant 0 : index
    %38 = vector.load %arg10[%c0_23, %c0_24] : memref<1x32xf32, #tpu.memory_space<vmem>>, vector<1x32xf32>
    %39 = vector.broadcast %38 : vector<1x32xf32> to vector<8x32xf32>
    %40 = arith.addf %37, %39 : vector<8x32xf32>
    %41 = vector.extract_strided_slice %30 {offsets = [0, 0], sizes = [8, 8], strides = [1, 1]} : vector<8x32xf32> to vector<8x8xf32>
    %c0_25 = arith.constant 0 : index
    %c0_26 = arith.constant 0 : index
    %c0_27 = arith.constant 0 : index
    %c0_28 = arith.constant 0 : index
    %42 = vector.load %arg11[%c0_25, %c0_26, %c0_27, %c0_28] : memref<1x4x8x8xf32, #tpu.memory_space<vmem>>, vector<1x1x8x8xf32>
    %43 = vector.shape_cast %42 : vector<1x1x8x8xf32> to vector<8x8xf32>
    %44 = vector.shape_cast %41 : vector<8x8xf32> to vector<1x1x8x8xf32>
    tpu.vector_store %arg11[%c0_25, %c0_26, %c0_27, %c0_28], %44 {strides = array<i32>} : memref<1x4x8x8xf32, #tpu.memory_space<vmem>>, vector<1x1x8x8xf32>,
    %45 = vector.extract_strided_slice %35 {offsets = [0, 0], sizes = [8, 8], strides = [1, 1]} : vector<8x32xf32> to vector<8x8xf32>
    %c0_29 = arith.constant 0 : index
    %c0_30 = arith.constant 0 : index
    %c0_31 = arith.constant 0 : index
    %c0_32 = arith.constant 0 : index
    %46 = vector.load %arg12[%c0_29, %c0_30, %c0_31, %c0_32] : memref<1x4x8x8xf32, #tpu.memory_space<vmem>>, vector<1x1x8x8xf32>
    %47 = vector.shape_cast %46 : vector<1x1x8x8xf32> to vector<8x8xf32>
    %48 = vector.shape_cast %45 : vector<8x8xf32> to vector<1x1x8x8xf32>
    tpu.vector_store %arg12[%c0_29, %c0_30, %c0_31, %c0_32], %48 {strides = array<i32>} : memref<1x4x8x8xf32, #tpu.memory_space<vmem>>, vector<1x1x8x8xf32>,
    %49 = vector.extract_strided_slice %40 {offsets = [0, 0], sizes = [8, 8], strides = [1, 1]} : vector<8x32xf32> to vector<8x8xf32>
    %c0_33 = arith.constant 0 : index
    %c0_34 = arith.constant 0 : index
    %c0_35 = arith.constant 0 : index
    %c0_36 = arith.constant 0 : index
    %50 = vector.load %arg13[%c0_33, %c0_34, %c0_35, %c0_36] : memref<1x4x8x8xf32, #tpu.memory_space<vmem>>, vector<1x1x8x8xf32>
    %51 = vector.shape_cast %50 : vector<1x1x8x8xf32> to vector<8x8xf32>
    %52 = vector.shape_cast %49 : vector<8x8xf32> to vector<1x1x8x8xf32>
    tpu.vector_store %arg13[%c0_33, %c0_34, %c0_35, %c0_36], %52 {strides = array<i32>} : memref<1x4x8x8xf32, #tpu.memory_space<vmem>>, vector<1x1x8x8xf32>,
    %53 = vector.extract_strided_slice %30 {offsets = [0, 8], sizes = [8, 8], strides = [1, 1]} : vector<8x32xf32> to vector<8x8xf32>
    %c0_37 = arith.constant 0 : index
    %c1 = arith.constant 1 : index
    %c0_38 = arith.constant 0 : index
    %c0_39 = arith.constant 0 : index
    %54 = vector.load %arg11[%c0_37, %c1, %c0_38, %c0_39] : memref<1x4x8x8xf32, #tpu.memory_space<vmem>>, vector<1x1x8x8xf32>
    %55 = vector.shape_cast %54 : vector<1x1x8x8xf32> to vector<8x8xf32>
    %56 = vector.shape_cast %53 : vector<8x8xf32> to vector<1x1x8x8xf32>
    tpu.vector_store %arg11[%c0_37, %c1, %c0_38, %c0_39], %56 {strides = array<i32>} : memref<1x4x8x8xf32, #tpu.memory_space<vmem>>, vector<1x1x8x8xf32>,
    %57 = vector.extract_strided_slice %35 {offsets = [0, 8], sizes = [8, 8], strides = [1, 1]} : vector<8x32xf32> to vector<8x8xf32>
    %c0_40 = arith.constant 0 : index
    %c1_41 = arith.constant 1 : index
    %c0_42 = arith.constant 0 : index
    %c0_43 = arith.constant 0 : index
    %58 = vector.load %arg12[%c0_40, %c1_41, %c0_42, %c0_43] : memref<1x4x8x8xf32, #tpu.memory_space<vmem>>, vector<1x1x8x8xf32>
    %59 = vector.shape_cast %58 : vector<1x1x8x8xf32> to vector<8x8xf32>
    %60 = vector.shape_cast %57 : vector<8x8xf32> to vector<1x1x8x8xf32>
    tpu.vector_store %arg12[%c0_40, %c1_41, %c0_42, %c0_43], %60 {strides = array<i32>} : memref<1x4x8x8xf32, #tpu.memory_space<vmem>>, vector<1x1x8x8xf32>,
    %61 = vector.extract_strided_slice %40 {offsets = [0, 8], sizes = [8, 8], strides = [1, 1]} : vector<8x32xf32> to vector<8x8xf32>
    %c0_44 = arith.constant 0 : index
    %c1_45 = arith.constant 1 : index
    %c0_46 = arith.constant 0 : index
    %c0_47 = arith.constant 0 : index
    %62 = vector.load %arg13[%c0_44, %c1_45, %c0_46, %c0_47] : memref<1x4x8x8xf32, #tpu.memory_space<vmem>>, vector<1x1x8x8xf32>
    %63 = vector.shape_cast %62 : vector<1x1x8x8xf32> to vector<8x8xf32>
    %64 = vector.shape_cast %61 : vector<8x8xf32> to vector<1x1x8x8xf32>
    tpu.vector_store %arg13[%c0_44, %c1_45, %c0_46, %c0_47], %64 {strides = array<i32>} : memref<1x4x8x8xf32, #tpu.memory_space<vmem>>, vector<1x1x8x8xf32>,
    %65 = vector.extract_strided_slice %30 {offsets = [0, 16], sizes = [8, 8], strides = [1, 1]} : vector<8x32xf32> to vector<8x8xf32>
    %c0_48 = arith.constant 0 : index
    %c2 = arith.constant 2 : index
    %c0_49 = arith.constant 0 : index
    %c0_50 = arith.constant 0 : index
    %66 = vector.load %arg11[%c0_48, %c2, %c0_49, %c0_50] : memref<1x4x8x8xf32, #tpu.memory_space<vmem>>, vector<1x1x8x8xf32>
    %67 = vector.shape_cast %66 : vector<1x1x8x8xf32> to vector<8x8xf32>
    %68 = vector.shape_cast %65 : vector<8x8xf32> to vector<1x1x8x8xf32>
    tpu.vector_store %arg11[%c0_48, %c2, %c0_49, %c0_50], %68 {strides = array<i32>} : memref<1x4x8x8xf32, #tpu.memory_space<vmem>>, vector<1x1x8x8xf32>,
    %69 = vector.extract_strided_slice %35 {offsets = [0, 16], sizes = [8, 8], strides = [1, 1]} : vector<8x32xf32> to vector<8x8xf32>
    %c0_51 = arith.constant 0 : index
    %c2_52 = arith.constant 2 : index
    %c0_53 = arith.constant 0 : index
    %c0_54 = arith.constant 0 : index
    %70 = vector.load %arg12[%c0_51, %c2_52, %c0_53, %c0_54] : memref<1x4x8x8xf32, #tpu.memory_space<vmem>>, vector<1x1x8x8xf32>
    %71 = vector.shape_cast %70 : vector<1x1x8x8xf32> to vector<8x8xf32>
    %72 = vector.shape_cast %69 : vector<8x8xf32> to vector<1x1x8x8xf32>
    tpu.vector_store %arg12[%c0_51, %c2_52, %c0_53, %c0_54], %72 {strides = array<i32>} : memref<1x4x8x8xf32, #tpu.memory_space<vmem>>, vector<1x1x8x8xf32>,
    %73 = vector.extract_strided_slice %40 {offsets = [0, 16], sizes = [8, 8], strides = [1, 1]} : vector<8x32xf32> to vector<8x8xf32>
    %c0_55 = arith.constant 0 : index
    %c2_56 = arith.constant 2 : index
    %c0_57 = arith.constant 0 : index
    %c0_58 = arith.constant 0 : index
    %74 = vector.load %arg13[%c0_55, %c2_56, %c0_57, %c0_58] : memref<1x4x8x8xf32, #tpu.memory_space<vmem>>, vector<1x1x8x8xf32>
    %75 = vector.shape_cast %74 : vector<1x1x8x8xf32> to vector<8x8xf32>
    %76 = vector.shape_cast %73 : vector<8x8xf32> to vector<1x1x8x8xf32>
    tpu.vector_store %arg13[%c0_55, %c2_56, %c0_57, %c0_58], %76 {strides = array<i32>} : memref<1x4x8x8xf32, #tpu.memory_space<vmem>>, vector<1x1x8x8xf32>,
    %77 = vector.extract_strided_slice %30 {offsets = [0, 24], sizes = [8, 8], strides = [1, 1]} : vector<8x32xf32> to vector<8x8xf32>
    %c0_59 = arith.constant 0 : index
    %c3 = arith.constant 3 : index
    %c0_60 = arith.constant 0 : index
    %c0_61 = arith.constant 0 : index
    %78 = vector.load %arg11[%c0_59, %c3, %c0_60, %c0_61] : memref<1x4x8x8xf32, #tpu.memory_space<vmem>>, vector<1x1x8x8xf32>
    %79 = vector.shape_cast %78 : vector<1x1x8x8xf32> to vector<8x8xf32>
    %80 = vector.shape_cast %77 : vector<8x8xf32> to vector<1x1x8x8xf32>
    tpu.vector_store %arg11[%c0_59, %c3, %c0_60, %c0_61], %80 {strides = array<i32>} : memref<1x4x8x8xf32, #tpu.memory_space<vmem>>, vector<1x1x8x8xf32>,
    %81 = vector.extract_strided_slice %35 {offsets = [0, 24], sizes = [8, 8], strides = [1, 1]} : vector<8x32xf32> to vector<8x8xf32>
    %c0_62 = arith.constant 0 : index
    %c3_63 = arith.constant 3 : index
    %c0_64 = arith.constant 0 : index
    %c0_65 = arith.constant 0 : index
    %82 = vector.load %arg12[%c0_62, %c3_63, %c0_64, %c0_65] : memref<1x4x8x8xf32, #tpu.memory_space<vmem>>, vector<1x1x8x8xf32>
    %83 = vector.shape_cast %82 : vector<1x1x8x8xf32> to vector<8x8xf32>
    %84 = vector.shape_cast %81 : vector<8x8xf32> to vector<1x1x8x8xf32>
    tpu.vector_store %arg12[%c0_62, %c3_63, %c0_64, %c0_65], %84 {strides = array<i32>} : memref<1x4x8x8xf32, #tpu.memory_space<vmem>>, vector<1x1x8x8xf32>,
    %85 = vector.extract_strided_slice %40 {offsets = [0, 24], sizes = [8, 8], strides = [1, 1]} : vector<8x32xf32> to vector<8x8xf32>
    %c0_66 = arith.constant 0 : index
    %c3_67 = arith.constant 3 : index
    %c0_68 = arith.constant 0 : index
    %c0_69 = arith.constant 0 : index
    %86 = vector.load %arg13[%c0_66, %c3_67, %c0_68, %c0_69] : memref<1x4x8x8xf32, #tpu.memory_space<vmem>>, vector<1x1x8x8xf32>
    %87 = vector.shape_cast %86 : vector<1x1x8x8xf32> to vector<8x8xf32>
    %88 = vector.shape_cast %85 : vector<8x8xf32> to vector<1x1x8x8xf32>
    tpu.vector_store %arg13[%c0_66, %c3_67, %c0_68, %c0_69], %88 {strides = array<i32>} : memref<1x4x8x8xf32, #tpu.memory_space<vmem>>, vector<1x1x8x8xf32>,
    return
  }
  func.func @transform_0(%arg0: i32, %arg1: i32) -> (i32, i32, i32) {
    %c0_i32 = arith.constant 0 : i32
    %c0_i32_0 = arith.constant 0 : i32
    return %arg0, %arg1, %c0_i32 : i32, i32, i32
  }
  func.func @transform_1(%arg0: i32, %arg1: i32) -> (i32, i32) {
    %c0_i32 = arith.constant 0 : i32
    %c0_i32_0 = arith.constant 0 : i32
    %c0_i32_1 = arith.constant 0 : i32
    return %c0_i32, %c0_i32_0 : i32, i32
  }
  func.func @transform_2(%arg0: i32, %arg1: i32) -> (i32, i32) {
    %c0_i32 = arith.constant 0 : i32
    %c0_i32_0 = arith.constant 0 : i32
    %c0_i32_1 = arith.constant 0 : i32
    return %c0_i32, %c0_i32_0 : i32, i32
  }
  func.func @transform_3(%arg0: i32, %arg1: i32) -> (i32, i32) {
    %c0_i32 = arith.constant 0 : i32
    %c0_i32_0 = arith.constant 0 : i32
    %c0_i32_1 = arith.constant 0 : i32
    return %c0_i32, %c0_i32_0 : i32, i32
  }
  func.func @transform_4(%arg0: i32, %arg1: i32) -> (i32, i32) {
    %c0_i32 = arith.constant 0 : i32
    %c0_i32_0 = arith.constant 0 : i32
    %c0_i32_1 = arith.constant 0 : i32
    return %c0_i32, %c0_i32_0 : i32, i32
  }
  func.func @transform_5(%arg0: i32, %arg1: i32) -> (i32, i32) {
    %c0_i32 = arith.constant 0 : i32
    %c0_i32_0 = arith.constant 0 : i32
    %c0_i32_1 = arith.constant 0 : i32
    return %c0_i32, %c0_i32_0 : i32, i32
  }
  func.func @transform_6(%arg0: i32, %arg1: i32) -> (i32, i32) {
    %c0_i32 = arith.constant 0 : i32
    %c0_i32_0 = arith.constant 0 : i32
    %c0_i32_1 = arith.constant 0 : i32
    return %c0_i32, %c0_i32_0 : i32, i32
  }
  func.func @transform_7(%arg0: i32, %arg1: i32) -> (i32, i32) {
    %c0_i32 = arith.constant 0 : i32
    %c0_i32_0 = arith.constant 0 : i32
    %c0_i32_1 = arith.constant 0 : i32
    return %c0_i32, %c0_i32_0 : i32, i32
  }
  func.func @transform_8(%arg0: i32, %arg1: i32) -> (i32, i32) {
    %c0_i32 = arith.constant 0 : i32
    %c0_i32_0 = arith.constant 0 : i32
    %c0_i32_1 = arith.constant 0 : i32
    return %c0_i32, %c0_i32_0 : i32, i32
  }
  func.func @transform_9(%arg0: i32, %arg1: i32) -> (i32, i32, i32, i32) {
    %c0_i32 = arith.constant 0 : i32
    %c0_i32_0 = arith.constant 0 : i32
    %c0_i32_1 = arith.constant 0 : i32
    return %arg0, %c0_i32, %arg1, %c0_i32_0 : i32, i32, i32, i32
  }
  func.func @transform_10(%arg0: i32, %arg1: i32) -> (i32, i32, i32, i32) {
    %c0_i32 = arith.constant 0 : i32
    %c0_i32_0 = arith.constant 0 : i32
    %c0_i32_1 = arith.constant 0 : i32
    return %arg0, %c0_i32, %arg1, %c0_i32_0 : i32, i32, i32, i32
  }
  func.func @transform_11(%arg0: i32, %arg1: i32) -> (i32, i32, i32, i32) {
    %c0_i32 = arith.constant 0 : i32
    %c0_i32_0 = arith.constant 0 : i32
    %c0_i32_1 = arith.constant 0 : i32
    return %arg0, %c0_i32, %arg1, %c0_i32_0 : i32, i32, i32, i32
  }
}

</mosaic_0001>

<bundles_post_ra>
// kernel: tpu_custom_call.1
= control target key start
LH: loop header
LB: loop body
LE: loop exit
PB: predicated region body
PF: predicated region fallthrough
CT: control target
= control target key end

     0   :  { %s1766_s0 = inlined_call_operand.hbm [shape: f32[2,8,32], index: 0, kind: input, shape index: {}]   ;;  %s1767_s1 = inlined_call_operand.hbm [shape: f32[1,32], index: 1, kind: input, shape index: {}]   ;;  %s1768_s2 = inlined_call_operand.vmem [shape: f32[1,32], index: 2, kind: input, shape index: {}]   ;;  %s1769_s3 = inlined_call_operand.hbm [shape: f32[32,32], index: 3, kind: input, shape index: {}]   ;;  %s1770_s4 = inlined_call_operand.vmem [shape: f32[1,32], index: 4, kind: input, shape index: {}]   ;;  %s1771_s5 = inlined_call_operand.hbm [shape: f32[32,32], index: 5, kind: input, shape index: {}]   ;;  %s1772_s6 = inlined_call_operand.vmem [shape: f32[1,32], index: 6, kind: input, shape index: {}]   ;;  %s1773_s7 = inlined_call_operand.hbm [shape: f32[32,32], index: 7, kind: input, shape index: {}]   ;;  %s1774_s8 = inlined_call_operand.vmem [shape: f32[1,32], index: 8, kind: input, shape index: {}]   ;;  %s1775_s9 = inlined_call_operand.hbm [shape: f32[2,4,8,8], index: 9, kind: output, shape index: {0}]   ;;  %s1776_s10 = inlined_call_operand.hbm [shape: f32[2,4,8,8], index: 10, kind: output, shape index: {1}]   ;;  %s1777_s11 = inlined_call_operand.hbm [shape: f32[2,4,8,8], index: 11, kind: output, shape index: {2}]  }
   0x1   :  { %1781 = sst [smem:[#allocation22_spill]] %s1766_s0 }
   0x2   :  { %1782 = sst [smem:[#allocation23_spill]] %s1767_s1 }
   0x3   :  { %1783 = sst [smem:[#allocation24_spill]] %s1768_s2 }
   0x4   :  { %1784 = sst [smem:[#allocation25_spill]] %s1769_s3 }
   0x5   :  { %1785 = sst [smem:[#allocation26_spill]] %s1771_s5 }
   0x6   :  { %1786 = sst [smem:[#allocation27_spill]] %s1773_s7 }
   0x7   :  { %17 = vsyncpa [#allocation3], 0 }
   0x8   :  { %19 = vsyncpa [#allocation3 + $0x1], 0 }
   0x9   :  { %20 = vsyncpa [#allocation6], 0 }
   0xa   :  { %21 = vsyncpa [#allocation9], 0 }
   0xb   :  { %22 = vsyncpa [#allocation4], 0 }
   0xc   :  { %24 = vsyncpa [#allocation4 + $0x1], 0 }
   0xd   :  { %25 = vsyncpa [#allocation13], 0 }
   0xe   :  { %27 = vsyncpa [#allocation13 + $0x1], 0  ;;  %s1488_s17 = smov 0   ;;  %s1490_s18 = smov 0  }
   0xf   :  { %s1492_s19 = smov 0   ;;  %s1494_s20 = smov 0  }
  0x10   :  { %s1496_s21 = smov 0   ;;  %s1498_s22 = smov 0  }
  0x11 LB: > { %1787 = sst [smem:[#allocation20_spill]] %s1410_s21  ;;  %s1519_s23 = sadd.s32 4294967295, %s1414_s22   ;;  %s1414_s22 = sphi %s1498_s22, %s33_s22   ;;  %s1410_s21 = sphi %s1496_s21, %s1802_s21   ;;  %s1406_s20 = sphi %s1494_s20, %s1801_s20   ;;  %s1402_s19 = sphi %s1492_s19, %s1805_s19   ;;  %s1398_s18 = sphi %s1490_s18, %s1804_s18   ;;  %s1394_s17 = sphi %s1488_s17, %s1803_s17  }
  0x12   : > { %p941_p0 = scmp.ge.s32.totalorder %s1414_s22, 1  ;;  %p68_p1 = scmp.eq.s32.totalorder %s1519_s23, 0 }
  0x13   : > { %p330_p2 = scmp.lt.s32.totalorder %s1414_s22, 3  ;;  %s1788_s1 = sld [smem:[#allocation23_spill]] }
  0x14   : > { %p946_p4 = scmp.ge.s32.totalorder %s1414_s22, 2  ;;  %s1416_s28 = smov [#allocation5]  }
  0x15   : > { %p1527_p3 = pnand %p941_p0, %p330_p2  ;;  %s344_s29 = sshll.u32 %s1416_s28, 4  ;;  %s345_s29 = int_to_ptr.vmem [resolvable:$true] %s344_s29 }
  0x16   : > { %s1791_s5 = sld [smem:[#allocation26_spill]]  ;;  %s1417_s15 = smov [#allocation8]  }
  0x17   : > { %p1008_p5 = pneg %p1527_p3  ;;  %s375_s16 = sshll.u32 %s1417_s15, 4  ;;  %s376_s16 = int_to_ptr.vmem [resolvable:$true] %s375_s16 }
  0x18   : > { %s1792_s3 = sld [smem:[#allocation25_spill]]  ;;  %s1419_s12 = smov 8  }
  0x19   : > { %s342_s26 = sshll.u32 %s1788_s1, 4  ;;  %p1536_p6 = pnand %p1008_p5, %p68_p1  ;;  %s343_s26 = int_to_ptr.hbm [resolvable:$true] %s342_s26 }
  0x1a   : > { %s1418_s1 = smov 128   ;;  %s1793_s7 = sld [smem:[#allocation27_spill]] }
  0x1b   : > { %1011 = dma.hbm_to_vmem [thread:$0]  (!%p1536_p6), %s343_s26, 16, %s345_s29, [#allocation6]  }
  0x1c   : > { %s373_s14 = sshll.u32 %s1791_s5, 4  ;;  %s1420_s15 = smov [#allocation7]   ;;  %s374_s14 = int_to_ptr.hbm [resolvable:$true] %s373_s14 }
  0x1d   : > { %1017 = dma.hbm_to_vmem [thread:$0]  (!%p1536_p6), %s374_s14, 512, %s376_s16, [#allocation9], %s1418_s1, %s1418_s1, %s1419_s12  }
  0x1e   : > { %s356_s28 = sshll.u32 %s1792_s3, 4  ;;  %s358_s24 = sshll.u32 %s1420_s15, 4  ;;  %s357_s28 = int_to_ptr.hbm [resolvable:$true] %s356_s28  ;;  %s359_s24 = int_to_ptr.vmem [resolvable:$true] %s358_s24 }
  0x1f   : > { %1014 = dma.hbm_to_vmem [thread:$0]  (!%p1536_p6), %s357_s28, 512, %s359_s24, [#allocation6], %s1418_s1, %s1418_s1, %s1419_s12  }
  0x20   : > { %s390_s29 = sshll.u32 %s1793_s7, 4  ;;  %s1421_s25 = smov [#allocation10]   ;;  %s391_s29 = int_to_ptr.hbm [resolvable:$true] %s390_s29 }
  0x21   : > { %s392_s3 = sshll.u32 %s1421_s25, 4  ;;  %s45_s14 = sadd.s32 1, %s1410_s21  ;;  %s393_s3 = int_to_ptr.vmem [resolvable:$true] %s392_s3 }
  0x22   : > { %1020 = dma.hbm_to_vmem [thread:$0]  (!%p1536_p6), %s391_s29, 512, %s393_s3, [#allocation9], %s1418_s1, %s1418_s1, %s1419_s12  }
  0x23   : > { %s1779_s16 = sadd.s32 4294967294, %s1414_s22   ;;  %p47_p7 = scmp.ge.s32.totalorder %s45_s14, 2 }
  0x24   : > { %s54_s13 = sadd.s32 1, %s1402_s19  ;;  %p61_p8 = scmp.ne.s32.totalorder %s1402_s19, %s1398_s18 }
  0x25   : > { %s1807_s14 = smov (%p47_p7, %s45_s14), 0  ;;  %p62_p9 = scmp.eq.s32.totalorder %s1414_s22, 0 }
  0x26   : > { %1794 = sst [smem:[#allocation21_spill]] %s1807_s14  ;;  %p67_p10 = scmp.ne.s32.totalorder %s1398_s18, %s1394_s17 }
  0x27   : > { %s49_s28 = ssub.s32 %s1410_s21, %s1807_s14  ;;  %p261_p11 = scmp.eq.s32.totalorder %s1519_s23, 1 }
  0x28   : > { %p52_p12 = scmp.eq.s32.totalorder %s49_s28, 0  ;;  %p1572_p13 = por %p68_p1, %p67_p10 }
  0x29   : > { %p1576_p0 = por %p261_p11, %p61_p8  ;;  %p267_p2 = scmp.eq.s32.totalorder %s1779_s16, 1 }
  0x2a   : > { %s1583_s3 = scalar_select %p52_p12, %s1402_s19, %s54_s13  }
  0x2b   : > { %p63_p5 = por %p62_p9, %p61_p8  ;;  %p1585_p6 = por %p267_p2, %p67_p10 }
  0x2c   : > { %s409_s26 = sand.u32 1, %s1402_s19   ;;  %s948_s29 = sshll.u32 %s1410_s21, 3 }
  0x2d   : > { %p1039_p7 = scmp.lt.s32.totalorder %s1414_s22, 2  ;;  %s947_s15 = sshll.u32 %s409_s26, 3 }
  0x2e   : > { %s1798_s0 = sld [smem:[#allocation22_spill]]  ;;  %s413_s7 = scalar_lea.vmem [#allocation2], %s947_s15 }
  0x2f   : > { %s422_s14 = sshll.u32 %s413_s7, 4  ;;  %p1022_p11 = pnand %p1039_p7, %p63_p5  ;;  %s423_s14 = int_to_ptr.vmem [resolvable:$true] %s422_s14 }
  0x30   : > { %s410_s13 = scalar_lea.sflag [#allocation3], %s409_s26  ;;  %s1598_s16 = sand.u32 (!%p1527_p3), 1, %s1398_s18  }
  0x31   : > { %s950_s21 = sshll.u32 (!%p1527_p3), %s1598_s16, 3  ;;  %s434_s24 = scalar_lea.sflag (!%p1527_p3), [#allocation3], %s1598_s16 }
  0x32   : > { %431 = sbr.rel (%p1527_p3) target bundleno = 610 (0x262), region = 56 }
  0x34   : > { %s418_s28 = scalar_lea.hbm %s1798_s0, %s948_s29  ;;  %s437_s29 = scalar_lea.vmem (!%p1527_p3), [#allocation2], %s950_s21 }
  0x35   : > { %s420_s5 = sshll.u32 %s418_s28, 4  ;;  %s421_s5 = int_to_ptr.hbm [resolvable:$true] %s420_s5 }
  0x36   : > { %1024 = dma.hbm_to_vmem [thread:$0]  (!%p1022_p11), %s421_s5, 128, %s423_s14, %s410_s13  }
  0x37   : > { %1373 = dma.done.wait (%p1572_p13), %s434_s24, 128  }
  0x38   : > { %1375 = vsyncadd (%p1572_p13), %s434_s24, 4294967168 }
  0x39   : > { %1377 = dma.done.wait (%p68_p1), [#allocation6], 528  }
  0x3a   : > { %1379 = vsyncadd (%p68_p1), [#allocation6], 4294966768 }
  0x3b   : > { %1381 = dma.done.wait (%p68_p1), [#allocation9], 1024  }
  0x3c   : > { %1383 = vsyncadd (%p68_p1), [#allocation9], 4294966272  ;;  %vm508_vm0 = vcmask 261120   ;;  %v507_v0 = vld [vmem:[%s437_s29] sm:$0xff]  ;;  %v1422_v2 = vmov 32.0   ;;  %v548_v23 = vld [vmem:[#allocation7] sm:$0xff] }
  0x3d   : > { %v509_v1 = vsel %vm508_vm0, %v507_v0, 0.0  ;;  %1110 = vrcp.f32 %v1422_v2  ;;  %v551_v14 = vld [vmem:[#allocation7 + $0x18] sm:$0xff]  ;;  %v550_v17 = vld [vmem:[#allocation7 + $0x10] sm:$0xff]  ;;  %v549_v20 = vld [vmem:[#allocation7 + $0x8] sm:$0xff]  ;;  %s1799_s2 = sld [smem:[#allocation24_spill]]  ;;  %s955_s21 = sshll.u32 %s1598_s16, 5 }
  0x3e   : > { %510 = vadd.xlane.f32.xlu0 %v509_v1  ;;  %v582_v15 = vld [vmem:[#allocation8 + $0x18] sm:$0xff]  ;;  %571 = vmatpush.msra.mxu0 %v551_v14  ;;  %v581_v18 = vld [vmem:[#allocation8 + $0x10] sm:$0xff]  ;;  %v580_v21 = vld [vmem:[#allocation8 + $0x8] sm:$0xff]  ;;  %vm635_vm5 = vcmask 64512   ;;  %s1629_s15 = scalar_lea.vmem [#allocation11], %s955_s21  ;;  %s1423_s25 = smov 104  }
  0x3f   : > { %v610_v16 = vld [vmem:[#allocation10 + $0x18] sm:$0xff]  ;;  %599 = vmatpush.msra.mxu1 %v582_v15  ;;  %v609_v19 = vld [vmem:[#allocation10 + $0x10] sm:$0xff]  ;;  %v608_v22 = vld [vmem:[#allocation10 + $0x8] sm:$0xff]  ;;  %s1424_s28 = smov 120   ;;  %s1633_s13 = scalar_lea.vmem [#allocation12], %s955_s21 }
  0x40   : > { %627 = vmatpush.msra.mxu2 %v610_v16  ;;  %572 = vmatpush.msra.mxu0 %v550_v17  ;;  %v579_v24 = vld [vmem:[#allocation8] sm:$0xff]  ;;  %v1105_v35 = vld [vmem:[#allocation5] ss:$0 sm:$0xff]  ;;  %v1107_v41 = vld [vmem:[%s1770_s4] ss:$0 sm:$0xff]  ;;  %s1640_s5 = scalar_lea.vmem [#allocation14], %s955_s21 }
  0x41   : > { %600 = vmatpush.msra.mxu1 %v581_v18  ;;  %v607_v25 = vld [vmem:[#allocation10] sm:$0xff]  ;;  %v1108_v42 = vld [vmem:[%s1772_s6] ss:$0 sm:$0xff]  ;;  %s1425_s7 = smov 112   ;;  %s1651_s21 = sshll.u32 %s1406_s20, 5 }
  0x42   : > { %628 = vmatpush.msra.mxu2 %v609_v19  ;;  %573 = vmatpush.msra.mxu0 %v549_v20  ;;  %v1109_v47 = vld [vmem:[%s1774_s8] ss:$0 sm:$0xff]  ;;  %s729_s27 = sshll.u32 %s1633_s13, 4  ;;  %s728_s26 = scalar_lea.hbm %s1776_s10, %s1651_s21  ;;  %s1667_s27 = int_to_ptr.vmem [resolvable:$true] %s729_s27 }
  0x43   : > { %v1111_v3 = vpop.eup %1110  ;;  %601 = vmatpush.msra.mxu1 %v580_v21  ;;  %v1106_v38 = vld [vmem:[%s1799_s2] ss:$0 sm:$0xff]  ;;  %s746_s20 = scalar_lea.hbm %s1777_s11, %s1651_s21  ;;  %s692_s24 = sand.u32 1, %s1519_s23  }
  0x44   : > { %v513_v4 = vmul.f32 32.0, %v1111_v3  ;;  %vm517_vm1 = vweird.f32 %v1111_v3  ;;  %629 = vmatpush.msra.mxu2 %v608_v22  ;;  %574 = vmatpush.msra.mxu0 %v548_v23  ;;  %s1669_s29 = sshll.u32 %s728_s26, 4  ;;  %s1672_s0 = sshll.u32 %s746_s20, 4  ;;  %s732_s29 = int_to_ptr.hbm [resolvable:$true] %s1669_s29  ;;  %s750_s0 = int_to_ptr.hbm [resolvable:$true] %s1672_s0 }
  0x45   : > { %602 = vmatpush.msra.mxu1 %v579_v24  ;;  %s1682_s23 = scalar_lea.sflag [#allocation13], %s692_s24  ;;  %s1278_s14 = sshra.s32 %s732_s29, 4  ;;  %s1279_s14 = int_to_ptr.hbm [resolvable:$true] %s1278_s14 }
  0x46   : > { %v514_v5 = vsub.f32 1.0, %v513_v4  ;;  %630 = vmatpush.msra.mxu2 %v607_v25  ;;  %s1280_s30 = scalar_lea.hbm %s1279_s14, 32  ;;  %p1285_p9 = scmp.lt.s32.totalorder %s1279_s14, %s1776_s10 }
  0x47   : > { %p1281_p1 = scmp.ne.s32.totalorder %s1279_s14, %s1280_s30 }
  0x48   : > { %v515_v6 = vmul.f32 %v1111_v3, %v514_v5 }
  0x49   : > { %p1282_p3 = pnand %p1281_p1, %p1576_p0 }
  0x4a   : > { %v516_v7 = vadd.f32 %v1111_v3, %v515_v6 }
  0x4b   : > { %p1283_p8 = pneg %p1282_p3 }
  0x4c   : > { %v518_v8 = vsel %vm517_vm1, %v1111_v3, %v516_v7 }
  0xb1   : > { %v511_v9 = vpop.xlane.xlu0 %510 }
  0xb2   : > { %v519_v10 = vmul.f32 %v518_v8, %v511_v9 }
  0xb4   : > { %v520_v11 = vsub.f32 %v507_v0, %v519_v10 }
  0xb6   : > { %v521_v12 = vmul.f32 %v520_v11, %v520_v11 }
  0xb8   : > { %v522_v13 = vsel %vm508_vm0, %v521_v12, 0.0 }
  0xb9   : > { %523 = vadd.xlane.f32.xlu0 %v522_v13 }
 0x12c   : > { %v524_v26 = vpop.xlane.xlu0 %523 }
 0x12d   : > { %v525_v27 = vmul.f32 %v524_v26, %v518_v8 }
 0x12f   : > { %v526_v28 = vadd.f32 1e-05, %v525_v27 }
 0x131   : > { %1112 = vrsqrt.f32 %v526_v28  ;;  %vm533_vm3 = vweird.f32 %v526_v28 }
 0x137   : > { %v1113_v29 = vpop.eup %1112 }
 0x138   : > { %v528_v30 = vmul.f32 %v1113_v29, %v526_v28  ;;  %vm534_vm2 = vweird.f32 %v1113_v29 }
 0x139   : > { %vm535_vm4 = vmor %vm533_vm3, %vm534_vm2 }
 0x13a   : > { %v529_v31 = vmul.f32 %v1113_v29, %v528_v30 }
 0x13c   : > { %v530_v32 = vmul.f32 0.5, %v529_v31 }
 0x13e   : > { %v531_v33 = vsub.f32 1.5, %v530_v32 }
 0x140   : > { %v532_v34 = vmul.f32 %v1113_v29, %v531_v33 }
 0x142   : > { %v536_v36 = vsel %vm535_vm4, %v1113_v29, %v532_v34 }
 0x143   : > { %v537_v37 = vmul.f32 %v536_v36, %v520_v11 }
 0x145   : > { %v542_v39 = vmul.f32 %v1105_v35, %v537_v37 }
 0x147   : > { %v547_v40 = vadd.f32 %v1106_v38, %v542_v39 }
 0x149   : > { %958 = vmatmul.msk.f32.vlgmr.msra.gmra.mxu0 %vm508_vm0, %v547_v40  ;;  %959 = vmatmul.msk.f32.vlgmr.msra.gmra.mxu1 %vm508_vm0, %v547_v40 }
 0x14a   : > { %960 = vmatmul.msk.f32.vlgmr.msra.gmra.mxu2 %vm508_vm0, %v547_v40 }
 0x1c6   : > { %v576_v43 = vpop.f32.mrf.mxu0  ;;  %v604_v44 = vpop.f32.mrf.mxu1 }
 0x1c7   : > { %v577_v45 = vadd.f32 %v1107_v41, %v576_v43  ;;  %v605_v46 = vadd.f32 %v1108_v42, %v604_v44 }
 0x1c9   : > { %636 = vst.msk [vmem:[%s1629_s15] sm:$0xff] %vm635_vm5, %v577_v45  ;;  %677 = vrot.lane.b32.xlu2 %v605_v46, %s1423_s25  ;;  %646 = vrot.lane.b32.xlu1 %v605_v46, %s1424_s28 }
 0x1ca   : > { %637 = vst.msk [vmem:[%s1633_s13] sm:$0xff] %vm635_vm5, %v605_v46 }
 0x1cd   : > { %v632_v48 = vpop.f32.mrf.mxu2 }
 0x1ce   : > { %v633_v49 = vadd.f32 %v1109_v47, %v632_v48 }
 0x1d0   : > { %638 = vst.msk [vmem:[%s1640_s5] sm:$0xff] %vm635_vm5, %v633_v49  ;;  %652 = vrot.lane.b32.xlu0 %v633_v49, %s1424_s28 }
 0x1d1   : > { %662 = vrot.lane.b32.xlu1 %v605_v46, %s1425_s7  ;;  %640 = vrot.lane.b32.xlu2 %v577_v45, %s1424_s28  ;;  %s1284_s28 = scalar_lea.hbm %s1776_s10, 64 }
 0x1d2   : > { %p1286_p10 = scmp.lt.s32.totalorder %s1284_s28, %s1280_s30 }
 0x1d4   : > { %p1287_p12 = por %p1286_p10, %p1285_p9 }
 0x1d6   : > { %p1288_p13 = pnand %p1287_p12, %p1283_p8 }
 0x1d9   : > { %657 = vrot.lane.b32.xlu1 %v577_v45, %s1425_s7  ;;  %667 = vrot.lane.b32.xlu2 %v633_v49, %s1425_s7  ;;  %s747_s7 = sshll.u32 %s1640_s5, 4  ;;  %s1675_s7 = int_to_ptr.vmem [resolvable:$true] %s747_s7 }
 0x1e1   : > { %672 = vrot.lane.b32.xlu1 %v577_v45, %s1423_s25  ;;  %682 = vrot.lane.b32.xlu2 %v633_v49, %s1423_s25 }
 0x223   : > { %v678_v50 = vpop.permute.xlu2 %677 }
 0x224   : > { %968 = vst.msk [vmem:[%s1633_s13 + $0x18] sm:$0xff] %vm635_vm5, %v678_v50 }
 0x22b   : > { %v641_v51 = vpop.permute.xlu2 %640 }
 0x22c   : > { %961 = vst.msk [vmem:[%s1629_s15 + $0x8] sm:$0xff] %vm635_vm5, %v641_v51 }
 0x233   : > { %v668_v52 = vpop.permute.xlu2 %667 }
 0x234   : > { %966 = vst.msk [vmem:[%s1640_s5 + $0x10] sm:$0xff] %vm635_vm5, %v668_v52 }
 0x23b   : > { %v647_v53 = vpop.permute.xlu1 %646  ;;  %v683_v54 = vpop.permute.xlu2 %682 }
 0x23c   : > { %962 = vst.msk [vmem:[%s1633_s13 + $0x8] sm:$0xff] %vm635_vm5, %v647_v53 }
 0x23d   : > { %969 = vst.msk [vmem:[%s1640_s5 + $0x18] sm:$0xff] %vm635_vm5, %v683_v54 }
 0x242   : > { %v653_v55 = vpop.permute.xlu0 %652 }
 0x243   : > { %963 = vst.msk [vmem:[%s1640_s5 + $0x8] sm:$0xff] %vm635_vm5, %v653_v55  ;;  %v663_v56 = vpop.permute.xlu1 %662 }
 0x244   : > { %965 = vst.msk [vmem:[%s1633_s13 + $0x10] sm:$0xff] %vm635_vm5, %v663_v56 }
 0x245   : > { %1291 = shalt.err (!%p1288_p13)
}
 0x246   : > { %s1426_s13 = smov 128   ;;  %s1427_s5 = smov 8  }
 0x247   : > { %1003 = dma.vmem_to_hbm [thread:$0]  (%p1576_p0), %s1667_s27, 512, %s732_s29, %s1682_s23, %s1426_s13, %s1426_s13, %s1427_s5  }
 0x248   : > { %s1306_s24 = sshra.s32 %s750_s0, 4  ;;  %s1312_s26 = scalar_lea.hbm %s1777_s11, 64  ;;  %s1307_s24 = int_to_ptr.hbm [resolvable:$true] %s1306_s24 }
 0x249   : > { %s1308_s2 = scalar_lea.hbm %s1307_s24, 32  ;;  %p1313_p11 = scmp.lt.s32.totalorder %s1307_s24, %s1777_s11 }
 0x24a   : > { %p1309_p2 = scmp.ne.s32.totalorder %s1307_s24, %s1308_s2  ;;  %p1314_p1 = scmp.lt.s32.totalorder %s1312_s26, %s1308_s2 }
 0x24c   : > { %p1310_p5 = pnand %p1309_p2, %p1576_p0  ;;  %p1315_p3 = por %p1314_p1, %p1313_p11 }
 0x24e   : > { %p1311_p7 = pneg %p1310_p5 }
 0x250   : > { %p1316_p8 = pnand %p1315_p3, %p1311_p7 }
 0x252   : > { %1319 = shalt.err (!%p1316_p8)
}
 0x253   : > { %1004 = dma.vmem_to_hbm [thread:$0]  (%p1576_p0), %s1675_s7, 512, %s750_s0, %s1682_s23, %s1426_s13, %s1426_s13, %s1427_s5   ;;  %v658_v57 = vpop.permute.xlu1 %657 }
 0x254   : > { %964 = vst.msk [vmem:[%s1629_s15 + $0x10] sm:$0xff] %vm635_vm5, %v658_v57  ;;  %s710_s20 = scalar_lea.hbm %s1775_s9, %s1651_s21  ;;  %s711_s24 = sshll.u32 %s1629_s15, 4  ;;  %s712_s24 = int_to_ptr.vmem [resolvable:$true] %s711_s24 }
 0x255   : > { %s713_s2 = sshll.u32 %s710_s20, 4  ;;  %s688_s14 = scalar_lea.sflag [#allocation4], %s1598_s16  ;;  %s714_s2 = int_to_ptr.hbm [resolvable:$true] %s713_s2 }
 0x256   : > { %s1334_s30 = sshra.s32 %s714_s2, 4  ;;  %s1340_s23 = scalar_lea.hbm %s1775_s9, 64  ;;  %s1335_s30 = int_to_ptr.hbm [resolvable:$true] %s1334_s30 }
 0x257   : > { %s1336_s26 = scalar_lea.hbm %s1335_s30, 32  ;;  %p1341_p13 = scmp.lt.s32.totalorder %s1335_s30, %s1775_s9 }
 0x258   : > { %p1337_p9 = scmp.ne.s32.totalorder %s1335_s30, %s1336_s26  ;;  %p1342_p2 = scmp.lt.s32.totalorder %s1340_s23, %s1336_s26 }
 0x25a   : > { %p1338_p10 = pnand %p1337_p9, %p1576_p0  ;;  %p1343_p5 = por %p1342_p2, %p1341_p13 }
 0x25b   : > { %v673_v58 = vpop.permute.xlu1 %672 }
 0x25c   : > { %967 = vst.msk [vmem:[%s1629_s15 + $0x18] sm:$0xff] %vm635_vm5, %v673_v58  ;;  %p1339_p12 = pneg %p1338_p10 }
 0x25e   : > { %p1344_p7 = pnand %p1343_p5, %p1339_p12 }
 0x260   : > { %1347 = shalt.err (!%p1344_p7)
}
 0x261   : > { %1002 = dma.vmem_to_hbm [thread:$0]  (%p1576_p0), %s712_s24, 512, %s714_s2, %s688_s14, %s1426_s13, %s1426_s13, %s1427_s5  }
 0x262 PF: > { %s764_s16 = sand.u32 1, %s1394_s17   ;;  %p1026_p11 = pnand %p946_p4, %p1585_p6 }
 0x263   : > { %s765_s15 = scalar_lea.sflag [#allocation4], %s764_s16 }
 0x264   : > { %p1027_p1 = pneg %p1026_p11 }
 0x266   : > { %1385 = dma.done.wait (%p1027_p1), %s765_s15, 512  }
 0x267   : > { %1387 = vsyncadd (%p1027_p1), %s765_s15, 4294966784  ;;  %s1800_s28 = sadd.s32 4294967294, %s1414_s22  }
 0x268   : > { %s774_s27 = sand.u32 1, %s1800_s28  }
 0x269   : > { %s775_s1 = scalar_lea.sflag [#allocation13], %s774_s27 }
 0x26a   : > { %1389 = dma.done.wait (%p1027_p1), %s775_s1, 1024  }
 0x26b   : > { %1391 = vsyncadd (%p1027_p1), %s775_s1, 4294966272  ;;  %s33_s22 = sadd.s32 1, %s1414_s22   ;;  %s1801_s20 = sld [smem:[#allocation20_spill]] }
 0x26c   : > { %p30_p0 = scmp.ge.s32.totalorder %s33_s22, 4   ;;  %s1802_s21 = sld [smem:[#allocation21_spill]] }
 0x26d   : > { %s1803_s17 = smov %s1398_s18  ;;  %s1804_s18 = smov %s1402_s19 }
 0x26e   : > { %s1805_s19 = smov %s1583_s3  ;;  %32 = sbr.rel (!%p30_p0) target bundleno = 17 (0x11), region = 158 }
 0x273   :  { %791 = vsyncpa [#allocation3], 1 }
 0x274   :  { %793 = vsyncpa [#allocation3 + $0x1], 1 }
 0x275   :  { %794 = vsyncpa [#allocation6], 1 }
 0x276   :  { %795 = vsyncpa [#allocation9], 1 }
 0x277   :  { %796 = vsyncpa [#allocation4], 1 }
 0x278   :  { %798 = vsyncpa [#allocation4 + $0x1], 1 }
 0x279   :  { %799 = vsyncpa [#allocation13], 1 }
 0x27a   :  { %801 = vsyncpa [#allocation13 + $0x1], 1 }

</bundles_post_ra>
